<compile_context>
chip_gen: v7x
topology: tpu7x:2x2x1
jax: 0.10.0
libtpu: 0.0.40
codegen_flags: <defaults>
</compile_context>

<pallas_src>
import functools
import math

import jax
import jax.numpy as jnp
from jax.experimental import pallas as pl
from jax.experimental.pallas import tpu as pltpu


def _fused_leaky_relu_kernel(x_ref, b_ref, o_ref, *, pos, neg):
    # x_ref: [tn, tl] tile; b_ref broadcasts over it (either [tn, 1] column
    # or [1, tl] row depending on the layout chosen by the wrapper).
    x = x_ref[...] + b_ref[...]
    # scale folded into the select: pos = scale, neg = negative_slope * scale
    o_ref[...] = (x * jnp.where(x >= 0, pos, neg)).astype(o_ref.dtype)


def _choose_tiles(n_rows, n_lanes, itemsize, target_bytes):
    """Pick (tn, tl) block shape.

    Rules:
      * tl == full row width whenever a (sublane x width) strip fits the byte
        budget (one contiguous HBM DMA per strip); otherwise a multiple of 128.
      * tn is a multiple of the sublane count (or the full row count); edge
        blocks are left partial (no host padding).
      * Only split into extra blocks when the whole tensor would otherwise be
        a single block and the halves stay >= 1 MiB (keeps both v7x cores fed
        without adding serial grid steps on single-core v5e/v6e).
    """
    sub = {4: 8, 2: 16, 1: 32}.get(itemsize, 8)   # sublane multiple per dtype
    lane = 128

    # --- lane tile ---
    if n_lanes <= lane or n_lanes * sub * itemsize <= target_bytes:
        tl = n_lanes                                  # full dim -> always legal
    else:
        max_tl = max(lane, (target_bytes // (sub * itemsize)) // lane * lane)
        tl = min(max_tl, (n_lanes // lane) * lane)    # multiple of 128

    # --- row tile ---
    tn = target_bytes // max(tl * itemsize, 1)
    tn = max(sub, (tn // sub) * sub)
    if tn >= n_rows:
        tn = n_rows                                   # full dim -> always legal

    # --- guarantee >=2 total blocks (v7x) without shrinking below ~1 MiB ---
    n_blocks = pl.cdiv(n_rows, tn) * pl.cdiv(n_lanes, tl)
    if n_blocks < 2:
        half = (tn // 2 // sub) * sub
        if half >= sub and half * tl * itemsize >= (1 << 20):
            tn = half
    return tn, tl


def fused_leaky_relu(x, bias=None, negative_slope=0.2, scale=2.0 ** 0.5,
                     block_bytes=4 * 1024 * 1024):
    """Forward pass matching FusedLeakyReLU.forward on an (N, C, ...) tensor."""
    orig_shape = x.shape
    assert x.ndim >= 2, "expected an (N, C, ...) tensor"
    B, C = x.shape[0], x.shape[1]
    L = math.prod(x.shape[2:]) if x.ndim > 2 else 1

    if bias is None:
        bias = jnp.zeros((C,), dtype=x.dtype)
    else:
        bias = bias.astype(x.dtype)

    itemsize = jnp.dtype(x.dtype).itemsize

    # Layout selection: keep the lane axis dense. For small flattened spatial
    # size (e.g. 2-D inputs where L == 1) fold channels into the lane axis.
    use_row_layout = (L < 128) and (16 * min(B, 8) > min(L, 128))

    if use_row_layout:
        R, W = B, C * L
        x2d = x.reshape(R, W)
        # bias varies along lanes: repeat each channel's bias L times.
        b_arr = (jnp.repeat(bias, L) if L > 1 else bias).reshape(1, W)
    else:
        R, W = B * C, L
        x2d = x.reshape(R, W)
        # bias is constant along lanes: one value per (b, c) row.
        b_arr = jnp.tile(bias, B).reshape(R, 1)

    tn, tl = _choose_tiles(R, W, itemsize, block_bytes)
    grid = (pl.cdiv(R, tn), pl.cdiv(W, tl))

    if use_row_layout:
        b_spec = pl.BlockSpec((1, tl), lambda i, j: (0, j))
    else:
        b_spec = pl.BlockSpec((tn, 1), lambda i, j: (i, 0))

    kernel = functools.partial(
        _fused_leaky_relu_kernel,
        pos=float(scale),
        neg=float(negative_slope) * float(scale),
    )

    out2d = pl.pallas_call(
        kernel,
        out_shape=jax.ShapeDtypeStruct((R, W), x.dtype),
        grid_spec=pltpu.PrefetchScalarGridSpec(
            num_scalar_prefetch=0,
            grid=grid,
            in_specs=[
                pl.BlockSpec((tn, tl), lambda i, j: (i, j)),
                b_spec,
            ],
            out_specs=pl.BlockSpec((tn, tl), lambda i, j: (i, j)),
        ),
        compiler_params=pltpu.CompilerParams(
            dimension_semantics=("parallel", "parallel"),
            vmem_limit_bytes=32 * 1024 * 1024,
        ),
        # Output has the same shape/dtype as x2d: let the buffer be reused.
        input_output_aliases={0: 0},
    )(x2d, b_arr)

    return out2d.reshape(orig_shape)


# TODO(synk): only the forward pass of FusedLeakyReLU is implemented; the CUDA
# autograd backward / double-backward paths are not translated.


def reference(x, bias=None, negative_slope=0.2, scale=2.0 ** 0.5):
    if bias is not None:
        rest = (1,) * (x.ndim - 2)
        x = x + bias.reshape(1, -1, *rest).astype(x.dtype)
    return jnp.where(x >= 0, x, x * negative_slope) * scale


def _check(out, ref):
    out = jax.block_until_ready(out)
    assert out.shape == ref.shape
    assert jnp.allclose(out, ref, atol=1e-5, rtol=1e-5), "mismatch vs reference"


if __name__ == "__main__":
    key = jax.random.PRNGKey(0)
    kx, kb, kx2, kb2, kx3, kb3, kx4, kb4 = jax.random.split(key, 8)

    # Main case: NCHW feature map (lane-dense [B*C, H*W] column-bias layout).
    B, C, H, W = 2, 4, 16, 16
    x = jax.random.normal(kx, (B, C, H, W), dtype=jnp.float32)
    bias = jax.random.normal(kb, (C,), dtype=jnp.float32) * 0.1
    _check(fused_leaky_relu(x, bias), reference(x, bias))

    # bias=None path (module built with bias=False).
    _check(fused_leaky_relu(x, None), reference(x, None))

    # 2-D (N, C) input: row-bias layout with channels on the lane axis.
    x2 = jax.random.normal(kx2, (8, 32), dtype=jnp.float32)
    b2 = jax.random.normal(kb2, (32,), dtype=jnp.float32) * 0.1
    _check(fused_leaky_relu(x2, b2), reference(x2, b2))

    # Tiny spatial map with non-aligned dims.
    x3 = jax.random.normal(kx3, (2, 3, 7, 7), dtype=jnp.float32)
    b3 = jax.random.normal(kb3, (3,), dtype=jnp.float32) * 0.1
    _check(fused_leaky_relu(x3, b3), reference(x3, b3))

    # Multi-block grid with partial edge blocks (small block budget so the
    # no-pad masked-edge path is actually exercised at test size).
    x4 = jax.random.normal(kx4, (2, 32, 16, 40), dtype=jnp.float32)
    b4 = jax.random.normal(kb4, (32,), dtype=jnp.float32) * 0.1
    _check(fused_leaky_relu(x4, b4, block_bytes=16 * 1024),
           reference(x4, b4))

    print("KERNEL_OK")
</pallas_src>

<mosaic_0001>
module attributes {stable_mosaic.version = 11 : i64} {
  func.func @_fused_leaky_relu_kernel(%arg0: i32, %arg1: i32, %arg2: memref<8x256xf32, #tpu.memory_space<vmem>>, %arg3: memref<8x1xf32, #tpu.memory_space<vmem>>, %arg4: memref<8x256xf32, #tpu.memory_space<vmem>>) attributes {dimension_semantics = [#tpu.dimension_semantics<parallel>, #tpu.dimension_semantics<parallel>], iteration_bounds = array<i64: 1, 1>, scalar_prefetch = 0 : i64, scratch_operands = 0 : i64, tpu.core_type = #tpu.core_type<tc>, window_params = [{transform_indices = @transform_0, window_bounds = array<i64: 8, 256>}, {transform_indices = @transform_1, window_bounds = array<i64: 8, 1>}, {transform_indices = @transform_2, window_bounds = array<i64: 8, 256>}]} {
    %c0 = arith.constant 0 : index
    %c0_0 = arith.constant 0 : index
    %0 = vector.load %arg2[%c0, %c0_0] : memref<8x256xf32, #tpu.memory_space<vmem>>, vector<8x256xf32>
    %c0_1 = arith.constant 0 : index
    %c0_2 = arith.constant 0 : index
    %1 = vector.load %arg3[%c0_1, %c0_2] : memref<8x1xf32, #tpu.memory_space<vmem>>, vector<8x1xf32>
    %2 = vector.broadcast %1 : vector<8x1xf32> to vector<8x256xf32>
    %3 = arith.addf %0, %2 : vector<8x256xf32>
    %cst = arith.constant 0.000000e+00 : f32
    %4 = vector.broadcast %cst : f32 to vector<8x256xf32>
    %5 = arith.cmpf oge, %3, %4 : vector<8x256xf32>
    %cst_3 = arith.constant 1.41421354 : f32
    %cst_4 = arith.constant 0.282842726 : f32
    %6 = vector.broadcast %cst_3 : f32 to vector<8x256xf32>
    %7 = vector.broadcast %cst_4 : f32 to vector<8x256xf32>
    %8 = arith.select %5, %6, %7 : vector<8x256xi1>, vector<8x256xf32>
    %9 = arith.mulf %3, %8 : vector<8x256xf32>
    %c0_5 = arith.constant 0 : index
    %c0_6 = arith.constant 0 : index
    %10 = vector.load %arg4[%c0_5, %c0_6] : memref<8x256xf32, #tpu.memory_space<vmem>>, vector<8x256xf32>
    tpu.vector_store %arg4[%c0_5, %c0_6], %9 {strides = array<i32>} : memref<8x256xf32, #tpu.memory_space<vmem>>, vector<8x256xf32>,
    return
  }
  func.func @transform_0(%arg0: i32, %arg1: i32) -> (i32, i32) {
    %c0_i32 = arith.constant 0 : i32
    return %arg0, %arg1 : i32, i32
  }
  func.func @transform_1(%arg0: i32, %arg1: i32) -> (i32, i32) {
    %c0_i32 = arith.constant 0 : i32
    %c0_i32_0 = arith.constant 0 : i32
    return %arg0, %c0_i32 : i32, i32
  }
  func.func @transform_2(%arg0: i32, %arg1: i32) -> (i32, i32) {
    %c0_i32 = arith.constant 0 : i32
    return %arg0, %arg1 : i32, i32
  }
}

</mosaic_0001>

<bundles_post_ra>
// kernel: tpu_custom_call.1
= control target key start
LH: loop header
LB: loop body
LE: loop exit
PB: predicated region body
PF: predicated region fallthrough
CT: control target
= control target key end

     0   :  { %7 = vsyncpa [#allocation3], 0  ;;  %s156_s0 = inlined_call_operand.hbm [shape: f32[8,256], index: 0, kind: input, shape index: {}, may-alias: {0,2}]   ;;  %s157_s1 = inlined_call_operand.vmem [shape: f32[8,1], index: 1, kind: input, shape index: {}]   ;;  %s158_s2 = inlined_call_operand.hbm [shape: f32[8,256], index: 2, kind: output, shape index: {}, may-alias: {0,2}]  }
   0x1   :  { %8 = vsyncpa [#allocation4], 0  ;;  %s110_s9 = smov [#allocation2]   ;;  %s62_s13 = scalar_lea.hbm %s156_s0, 256 }
   0x2   :  { %s15_s10 = sshll.u32 %s110_s9, 4  ;;  %p63_p0 = scmp.ne.s32.totalorder %s156_s0, %s62_s13  ;;  %s16_s10 = int_to_ptr.vmem [resolvable:$true] %s15_s10 }
   0x3   :  { %p66_p1 = scmp.lt.u32.totalorder %s62_s13, %s156_s0 }
   0x5   :  { %p68_p2 = pnand %p66_p1, %p63_p0 }
   0x7   :  { %71 = shalt.err (!%p68_p2)
}
   0x8   :  { %s72_s18 = scalar_lea.vmem %s16_s10, 256  ;;  %p77_p4 = scmp.lt.s32.totalorder %s16_s10, %s16_s10 }
   0x9   :  { %p73_p3 = scmp.ne.s32.totalorder %s16_s10, %s72_s18  ;;  %p78_p5 = scmp.lt.s32.totalorder %s72_s18, %s72_s18 }
   0xb   :  { %p79_p6 = por %p78_p5, %p77_p4 }
   0xd   :  { %p80_p7 = pnand %p79_p6, %p73_p3 }
   0xf   :  { %83 = shalt.err (!%p80_p7)
}
  0x10   :  { %18 = dma.hbm_to_vmem [thread:$0]  %s156_s0, 256, %s16_s10, [#allocation3]  }
  0x11   :  { %106 = dma.done.wait [#allocation3], 256  }
  0x12   :  { %107 = vsyncadd [#allocation3], 4294967040  ;;  %v111_v0 = vmov 0   ;;  %v26_v1 = vld [vmem:[%s157_s1] sm:$0xff]  ;;  %v25_v3 = vld [vmem:[#allocation2 + $0x8] sm:$0xff]  ;;  %s112_s23 = smov [#allocation5]  }
  0x13   :  { %61 = vset.pattern.permute.xlu0 %v111_v0  ;;  %v24_v2 = vld [vmem:[#allocation2] sm:$0xff]  ;;  %s48_s24 = sshll.u32 %s112_s23, 4  ;;  %v113_v7 = vmov 0.28284273   ;;  %s49_s24 = int_to_ptr.vmem [resolvable:$true] %s48_s24 }
  0x14   :  { %29 = vperm.xlu0 %61, %v26_v1   ;;  %s84_s0 = scalar_lea.vmem %s49_s24, 256  ;;  %p89_p9 = scmp.lt.s32.totalorder %s49_s24, %s49_s24 }
  0x15   :  { %p85_p8 = scmp.ne.s32.totalorder %s49_s24, %s84_s0  ;;  %p90_p10 = scmp.lt.s32.totalorder %s84_s0, %s84_s0 }
  0x17   :  { %p91_p11 = por %p90_p10, %p89_p9 }
  0x19   :  { %p92_p12 = pnand %p91_p11, %p85_p8 }
  0x93   :  { %v30_v4 = vpop.permute.xlu0 %29 }
  0x94   :  { %v32_v5 = vadd.f32 %v30_v4, %v24_v2  ;;  %v33_v6 = vadd.f32 %v30_v4, %v25_v3 }
  0x96   :  { %vm34_vm0 = vcmp.ge.f32.partialorder %v32_v5, 0.0  ;;  %vm35_vm1 = vcmp.ge.f32.partialorder %v33_v6, 0.0 }
  0x97   :  { %v36_v8 = vsel %vm34_vm0, 1.4142135, %v113_v7  ;;  %v37_v9 = vsel %vm35_vm1, 1.4142135, %v113_v7 }
  0x98   :  { %v38_v10 = vmul.f32 %v36_v8, %v32_v5  ;;  %v39_v11 = vmul.f32 %v37_v9, %v33_v6 }
  0x9a   :  { %40 = vst [vmem:[#allocation5] sm:$0xff] %v38_v10  ;;  %41 = vst [vmem:[#allocation5 + $0x8] sm:$0xff] %v39_v11 }
  0x9b   :  { %95 = shalt.err (!%p92_p12)
}
  0x9c   :  { %s96_s26 = scalar_lea.hbm %s158_s2, 256 }
  0x9d   :  { %p97_p13 = scmp.ne.s32.totalorder %s158_s2, %s96_s26  ;;  %p100_p0 = scmp.lt.u32.totalorder %s96_s26, %s158_s2 }
  0x9f   :  { %p102_p1 = pnand %p100_p0, %p97_p13 }
  0xa1   :  { %105 = shalt.err (!%p102_p1)
}
  0xa2   :  { %51 = dma.vmem_to_hbm [thread:$0]  %s49_s24, 256, %s158_s2, [#allocation4]  }
  0xa3   :  { %108 = dma.done.wait [#allocation4], 256  }
  0xa4   :  { %109 = vsyncadd [#allocation4], 4294967040 }
  0xa5   :  { %55 = vsyncpa [#allocation3], 1 }
  0xa6   :  { %56 = vsyncpa [#allocation4], 1 }

</bundles_post_ra>
